<compile_context>
chip_gen: v7x
topology: tpu7x:2x2x1
jax: 0.10.0
libtpu: 0.0.40
codegen_flags: <defaults>
</compile_context>

<pallas_src>
import functools

import jax
import jax.numpy as jnp
from jax.experimental import pallas as pl
from jax.experimental.pallas import tpu as pltpu


def se_kernel(x_ref, w1t_ref, b1_ref, w2t_ref, b2_ref, o_ref, *, inv_hw):
    # x_ref : (Nb, C, HW)   w1t: (C, Cr)  b1: (1, Cr)  w2t: (Cr, C)  b2: (1, C)
    x = x_ref[...].astype(jnp.float32)                        # (Nb, C, HW)

    # --- AdaptiveAvgPool2d(1): global mean over spatial positions ------------
    pooled = jnp.sum(x, axis=-1) * inv_hw                     # (Nb, C)

    # --- 1x1 Conv (C -> C//r) + folded BatchNorm + ReLU, batched over Nb -----
    h = jnp.dot(pooled, w1t_ref[...],
                preferred_element_type=jnp.float32) + b1_ref[...]   # (Nb, Cr)
    h = jnp.maximum(h, 0.0)

    # --- 1x1 Conv (C//r -> C) + folded BatchNorm + Hardsigmoid ---------------
    s = jnp.dot(h, w2t_ref[...],
                preferred_element_type=jnp.float32) + b2_ref[...]   # (Nb, C)
    # PyTorch Hardsigmoid: clip(x/6 + 1/2, 0, 1)
    s = jnp.clip(s * (1.0 / 6.0) + 0.5, 0.0, 1.0)

    # --- Excite: broadcast per-(image, channel) gate over the spatial axis ---
    o_ref[...] = (x * s[:, :, None]).astype(o_ref.dtype)


def _chip_limits():
    """Best-effort (physical VMEM bytes, has 2 TensorCores) for the local chip."""
    vmem_cap = 64 << 20            # conservative default = v7x per-TC VMEM
    multi_core = False
    try:
        kind = jax.devices()[0].device_kind.lower()
        if "v7" in kind:
            vmem_cap, multi_core = 64 << 20, True
        else:
            vmem_cap = 128 << 20   # v5e / v6e
    except Exception:
        pass
    try:
        info = pltpu.get_tpu_info()
        vmem_cap = int(getattr(info, "vmem_capacity_bytes", vmem_cap))
    except Exception:
        pass
    return vmem_cap, multi_core


def se_forward(x, w1, b1, w2, b2):
    """x: (N, C, H, W). w1:(Cr,C) b1:(Cr,) w2:(C,Cr) b2:(C,) with BN folded in.

    Works for f32 or bf16 activations (compute is always f32 in-register).
    """
    N, C, H, W = x.shape
    Cr = w1.shape[0]
    HW = H * W
    itemsize = jnp.dtype(x.dtype).itemsize

    # Free (metadata-only) reshape — no pad, no extra HBM pass.
    xf = x.reshape(N, C, HW)

    # Lane-dense GEMM operands: pre-transposed weights, row-vector biases.
    w1t = jnp.asarray(w1, jnp.float32).T          # (C, Cr)
    w2t = jnp.asarray(w2, jnp.float32).T          # (Cr, C)
    b1r = jnp.asarray(b1, jnp.float32).reshape(1, Cr)
    b2r = jnp.asarray(b2, jnp.float32).reshape(1, C)
    weight_bytes = (w1t.size + w2t.size + b1r.size + b2r.size) * 4

    # ---- Tiling policy ------------------------------------------------------
    vmem_cap, multi_core = _chip_limits()
    vmem_limit = int(vmem_cap * 0.85)             # explicit scoped-VMEM limit

    per_image_bytes = C * HW * itemsize
    # x block + out block, each double-buffered => ~4x block bytes resident,
    # plus (double-buffered) weights and ~1 MiB compiler slack.
    block_budget = max((vmem_limit - 2 * weight_bytes - (1 << 20)) // 4,
                       per_image_bytes)
    Nb = max(1, min(N, block_budget // per_image_bytes))

    if multi_core and N >= 2:
        # v7x only: keep >=2 (and an even number of) grid steps so both
        # TensorCores get balanced work under dimension_semantics=("parallel",).
        Nb = min(Nb, pl.cdiv(N, 2))
        steps = pl.cdiv(N, Nb)
        if steps % 2:
            Nb = pl.cdiv(N, steps + 1)

    num_blocks = pl.cdiv(N, Nb)

    # Guard: if a single image exceeds the budget (Nb == 1), raise the scoped
    # VMEM limit up to the physical capacity so the compiler does not reject it.
    need = 4 * Nb * per_image_bytes + 2 * weight_bytes + (1 << 20)
    vmem_limit = int(min(vmem_cap, max(vmem_limit, need)))
    # TODO(synk): add an HW-chunk tiling axis (two-pass pool with a partial-sum
    # accumulator) for feature maps whose single image does not fit in VMEM.

    # Honest cost estimate: exactly what is streamed (no padding anymore).
    cost = pl.CostEstimate(
        flops=4 * N * C * Cr + 2 * N * C * HW,
        transcendentals=0,
        bytes_accessed=2 * N * C * HW * itemsize + weight_bytes,
    )

    out = pl.pallas_call(
        functools.partial(se_kernel, inv_hw=1.0 / HW),
        out_shape=jax.ShapeDtypeStruct((N, C, HW), x.dtype),
        grid=(num_blocks,),
        in_specs=[
            pl.BlockSpec((Nb, C, HW), lambda n: (n, 0, 0)),
            pl.BlockSpec((C, Cr), lambda n: (0, 0)),
            pl.BlockSpec((1, Cr), lambda n: (0, 0)),
            pl.BlockSpec((Cr, C), lambda n: (0, 0)),
            pl.BlockSpec((1, C), lambda n: (0, 0)),
        ],
        out_specs=pl.BlockSpec((Nb, C, HW), lambda n: (n, 0, 0)),
        cost_estimate=cost,
        compiler_params=pltpu.CompilerParams(
            dimension_semantics=("parallel",),
            vmem_limit_bytes=vmem_limit,
        ),
    )(xf, w1t, b1r, w2t, b2r)

    return out.reshape(N, C, H, W)


def fold_bn(w, b, gamma, beta, mean, var, eps=1e-5):
    """Fold BatchNorm (eval mode) that follows a 1x1 conv into weight/bias."""
    scale = gamma / jnp.sqrt(var + eps)                   # (out_ch,)
    w_eff = w * scale[:, None]                            # (out_ch, in_ch)
    b_eff = (b - mean) * scale + beta                     # (out_ch,)
    return w_eff, b_eff


def se_reference(x, w1, b1, w2, b2):
    """Pure-JAX reference with the same (BN-folded) parameters."""
    pooled = jnp.mean(x, axis=(2, 3))                     # (N, C)
    h = pooled @ w1.T + b1[None, :]                       # (N, Cr)
    h = jnp.maximum(h, 0.0)
    s = h @ w2.T + b2[None, :]                            # (N, C)
    s = jnp.clip(s / 6.0 + 0.5, 0.0, 1.0)
    return x * s[:, :, None, None]


if __name__ == "__main__":
    # Small shapes consistent with the module: inchannels=32, reduction=4.
    N, C, H, W = 2, 32, 16, 16
    reduction = 4
    Cr = C // reduction

    key = jax.random.PRNGKey(0)
    ks = jax.random.split(key, 9)

    x = jax.random.normal(ks[0], (N, C, H, W), dtype=jnp.float32)

    # Conv2d 1x1 weights/biases (kernel_size=1 => dense matrices).
    w1_raw = jax.random.normal(ks[1], (Cr, C), dtype=jnp.float32) * 0.1
    b1_raw = jax.random.normal(ks[2], (Cr,), dtype=jnp.float32) * 0.1
    w2_raw = jax.random.normal(ks[3], (C, Cr), dtype=jnp.float32) * 0.1
    b2_raw = jax.random.normal(ks[4], (C,), dtype=jnp.float32) * 0.1

    # BatchNorm parameters (eval-mode running stats), deterministic values.
    gamma1 = 1.0 + 0.1 * jax.random.normal(ks[5], (Cr,), dtype=jnp.float32)
    beta1 = 0.1 * jax.random.normal(ks[6], (Cr,), dtype=jnp.float32)
    mean1 = 0.05 * jnp.arange(Cr, dtype=jnp.float32)
    var1 = 1.0 + 0.02 * jnp.arange(Cr, dtype=jnp.float32)

    gamma2 = 1.0 + 0.1 * jax.random.normal(ks[7], (C,), dtype=jnp.float32)
    beta2 = 0.1 * jax.random.normal(ks[8], (C,), dtype=jnp.float32)
    mean2 = 0.02 * jnp.arange(C, dtype=jnp.float32)
    var2 = 1.0 + 0.01 * jnp.arange(C, dtype=jnp.float32)

    # Fold BN into the 1x1 conv weights (parameter setup glue, outside kernel).
    w1, b1 = fold_bn(w1_raw, b1_raw, gamma1, beta1, mean1, var1)
    w2, b2 = fold_bn(w2_raw, b2_raw, gamma2, beta2, mean2, var2)

    # f32 path (matches the PyTorch module's dtype).
    out = jax.block_until_ready(se_forward(x, w1, b1, w2, b2))
    ref = se_reference(x, w1, b1, w2, b2)
    assert out.shape == (N, C, H, W)
    assert jnp.allclose(out, ref, atol=2e-3, rtol=2e-3), "f32 mismatch vs. JAX reference"

    # bf16 streaming path (halves HBM traffic on a bandwidth-bound kernel).
    x_bf = x.astype(jnp.bfloat16)
    out_bf = jax.block_until_ready(se_forward(x_bf, w1, b1, w2, b2))
    ref_bf = se_reference(x_bf.astype(jnp.float32), w1, b1, w2, b2)
    assert out_bf.dtype == jnp.bfloat16
    assert jnp.allclose(out_bf.astype(jnp.float32), ref_bf, atol=5e-2, rtol=5e-2), \
        "bf16 mismatch vs. JAX reference"

    print("KERNEL_OK")
</pallas_src>

<mosaic_0001>
module attributes {stable_mosaic.version = 11 : i64} {
  func.func @se_kernel(%arg0: i32, %arg1: memref<2x32x256xf32, #tpu.memory_space<vmem>>, %arg2: memref<32x8xf32, #tpu.memory_space<vmem>>, %arg3: memref<1x8xf32, #tpu.memory_space<vmem>>, %arg4: memref<8x32xf32, #tpu.memory_space<vmem>>, %arg5: memref<1x32xf32, #tpu.memory_space<vmem>>, %arg6: memref<2x32x256xf32, #tpu.memory_space<vmem>>) attributes {dimension_semantics = [#tpu.dimension_semantics<parallel>], iteration_bounds = array<i64: 1>, scalar_prefetch = 0 : i64, scratch_operands = 0 : i64, tpu.core_type = #tpu.core_type<tc>, window_params = [{transform_indices = @transform_0, window_bounds = array<i64: 2, 32, 256>}, {pipeline_mode = #tpu.pipeline_mode<synchronous>, transform_indices = @transform_1, window_bounds = array<i64: 32, 8>}, {pipeline_mode = #tpu.pipeline_mode<synchronous>, transform_indices = @transform_2, window_bounds = array<i64: 1, 8>}, {pipeline_mode = #tpu.pipeline_mode<synchronous>, transform_indices = @transform_3, window_bounds = array<i64: 8, 32>}, {pipeline_mode = #tpu.pipeline_mode<synchronous>, transform_indices = @transform_4, window_bounds = array<i64: 1, 32>}, {transform_indices = @transform_5, window_bounds = array<i64: 2, 32, 256>}]} {
    %c0 = arith.constant 0 : index
    %c0_0 = arith.constant 0 : index
    %c0_1 = arith.constant 0 : index
    %0 = vector.load %arg1[%c0, %c0_0, %c0_1] : memref<2x32x256xf32, #tpu.memory_space<vmem>>, vector<2x32x256xf32>
    %cst = arith.constant dense<0.000000e+00> : vector<2x32xf32>
    %1 = vector.multi_reduction <add>, %0, %cst [2] : vector<2x32x256xf32> to vector<2x32xf32>
    %cst_2 = arith.constant 3.906250e-03 : f32
    %2 = vector.broadcast %cst_2 : f32 to vector<2x32xf32>
    %3 = arith.mulf %1, %2 : vector<2x32xf32>
    %c0_3 = arith.constant 0 : index
    %c0_4 = arith.constant 0 : index
    %4 = vector.load %arg2[%c0_3, %c0_4] : memref<32x8xf32, #tpu.memory_space<vmem>>, vector<32x8xf32>
    %cst_5 = arith.constant dense<0.000000e+00> : vector<2x8xf32>
    %5 = tpu.matmul %3, %4, %cst_5 {dimension_numbers = #tpu.dot_dimension_numbers<[1], [0], [0], [1], [0, 0, 1, 1], [], []>} : vector<2x32xf32>, vector<32x8xf32>, vector<2x8xf32> -> vector<2x8xf32>
    %c0_6 = arith.constant 0 : index
    %c0_7 = arith.constant 0 : index
    %6 = vector.load %arg3[%c0_6, %c0_7] : memref<1x8xf32, #tpu.memory_space<vmem>>, vector<1x8xf32>
    %7 = vector.broadcast %6 : vector<1x8xf32> to vector<2x8xf32>
    %8 = arith.addf %5, %7 : vector<2x8xf32>
    %cst_8 = arith.constant 0.000000e+00 : f32
    %9 = vector.broadcast %cst_8 : f32 to vector<2x8xf32>
    %10 = arith.maximumf %8, %9 : vector<2x8xf32>
    %c0_9 = arith.constant 0 : index
    %c0_10 = arith.constant 0 : index
    %11 = vector.load %arg4[%c0_9, %c0_10] : memref<8x32xf32, #tpu.memory_space<vmem>>, vector<8x32xf32>
    %cst_11 = arith.constant dense<0.000000e+00> : vector<2x32xf32>
    %12 = tpu.matmul %10, %11, %cst_11 {dimension_numbers = #tpu.dot_dimension_numbers<[1], [0], [0], [1], [0, 0, 1, 1], [], []>} : vector<2x8xf32>, vector<8x32xf32>, vector<2x32xf32> -> vector<2x32xf32>
    %c0_12 = arith.constant 0 : index
    %c0_13 = arith.constant 0 : index
    %13 = vector.load %arg5[%c0_12, %c0_13] : memref<1x32xf32, #tpu.memory_space<vmem>>, vector<1x32xf32>
    %14 = vector.broadcast %13 : vector<1x32xf32> to vector<2x32xf32>
    %15 = arith.addf %12, %14 : vector<2x32xf32>
    %cst_14 = arith.constant 0.166666672 : f32
    %16 = vector.broadcast %cst_14 : f32 to vector<2x32xf32>
    %17 = arith.mulf %15, %16 : vector<2x32xf32>
    %cst_15 = arith.constant 5.000000e-01 : f32
    %18 = vector.broadcast %cst_15 : f32 to vector<2x32xf32>
    %19 = arith.addf %17, %18 : vector<2x32xf32>
    %cst_16 = arith.constant 0.000000e+00 : f32
    %cst_17 = arith.constant 1.000000e+00 : f32
    %20 = vector.broadcast %cst_16 : f32 to vector<2x32xf32>
    %21 = arith.maximumf %20, %19 : vector<2x32xf32>
    %22 = vector.broadcast %cst_17 : f32 to vector<2x32xf32>
    %23 = arith.minimumf %22, %21 : vector<2x32xf32>
    %24 = vector.shape_cast %23 : vector<2x32xf32> to vector<2x32x1xf32>
    %25 = vector.broadcast %24 : vector<2x32x1xf32> to vector<2x32x256xf32>
    %26 = arith.mulf %0, %25 : vector<2x32x256xf32>
    %c0_18 = arith.constant 0 : index
    %c0_19 = arith.constant 0 : index
    %c0_20 = arith.constant 0 : index
    %27 = vector.load %arg6[%c0_18, %c0_19, %c0_20] : memref<2x32x256xf32, #tpu.memory_space<vmem>>, vector<2x32x256xf32>
    tpu.vector_store %arg6[%c0_18, %c0_19, %c0_20], %26 {strides = array<i32>} : memref<2x32x256xf32, #tpu.memory_space<vmem>>, vector<2x32x256xf32>,
    return
  }
  func.func @transform_0(%arg0: i32) -> (i32, i32, i32) {
    %c0_i32 = arith.constant 0 : i32
    %c0_i32_0 = arith.constant 0 : i32
    %c0_i32_1 = arith.constant 0 : i32
    return %arg0, %c0_i32, %c0_i32_0 : i32, i32, i32
  }
  func.func @transform_1(%arg0: i32) -> (i32, i32) {
    %c0_i32 = arith.constant 0 : i32
    %c0_i32_0 = arith.constant 0 : i32
    %c0_i32_1 = arith.constant 0 : i32
    return %c0_i32, %c0_i32_0 : i32, i32
  }
  func.func @transform_2(%arg0: i32) -> (i32, i32) {
    %c0_i32 = arith.constant 0 : i32
    %c0_i32_0 = arith.constant 0 : i32
    %c0_i32_1 = arith.constant 0 : i32
    return %c0_i32, %c0_i32_0 : i32, i32
  }
  func.func @transform_3(%arg0: i32) -> (i32, i32) {
    %c0_i32 = arith.constant 0 : i32
    %c0_i32_0 = arith.constant 0 : i32
    %c0_i32_1 = arith.constant 0 : i32
    return %c0_i32, %c0_i32_0 : i32, i32
  }
  func.func @transform_4(%arg0: i32) -> (i32, i32) {
    %c0_i32 = arith.constant 0 : i32
    %c0_i32_0 = arith.constant 0 : i32
    %c0_i32_1 = arith.constant 0 : i32
    return %c0_i32, %c0_i32_0 : i32, i32
  }
  func.func @transform_5(%arg0: i32) -> (i32, i32, i32) {
    %c0_i32 = arith.constant 0 : i32
    %c0_i32_0 = arith.constant 0 : i32
    %c0_i32_1 = arith.constant 0 : i32
    return %arg0, %c0_i32, %c0_i32_0 : i32, i32, i32
  }
}

</mosaic_0001>

<bundles_post_ra>
// kernel: tpu_custom_call.1
= control target key start
LH: loop header
LB: loop body
LE: loop exit
PB: predicated region body
PF: predicated region fallthrough
CT: control target
= control target key end

     0   :  { %10 = vsyncpa [#allocation3], 0  ;;  %s826_s0 = inlined_call_operand.hbm [shape: f32[2,32,256], index: 0, kind: input, shape index: {}]   ;;  %s827_s1 = inlined_call_operand.hbm [shape: f32[32,8], index: 1, kind: input, shape index: {}]   ;;  %s828_s2 = inlined_call_operand.hbm [shape: f32[1,8], index: 2, kind: input, shape index: {}]   ;;  %s829_s3 = inlined_call_operand.hbm [shape: f32[8,32], index: 3, kind: input, shape index: {}]   ;;  %s830_s4 = inlined_call_operand.hbm [shape: f32[1,32], index: 4, kind: input, shape index: {}]   ;;  %s831_s5 = inlined_call_operand.hbm [shape: f32[2,32,256], index: 5, kind: output, shape index: {}]  }
   0x1   :  { %11 = vsyncpa [#allocation6], 0 }
   0x2   :  { %12 = vsyncpa [#allocation9], 0 }
   0x3   :  { %13 = vsyncpa [#allocation4], 0  ;;  %s633_s18 = smov [#allocation5]   ;;  %s493_s22 = scalar_lea.hbm %s827_s1, 512 }
   0x4   :  { %s31_s19 = sshll.u32 %s633_s18, 4  ;;  %p494_p0 = scmp.ne.s32.totalorder %s827_s1, %s493_s22  ;;  %s32_s19 = int_to_ptr.vmem [resolvable:$true] %s31_s19 }
   0x5   :  { %p497_p1 = scmp.lt.u32.totalorder %s493_s22, %s827_s1 }
   0x7   :  { %p499_p2 = pnand %p497_p1, %p494_p0 }
   0x9   :  { %502 = shalt.err (!%p499_p2)
}
   0xa   :  { %s503_s27 = scalar_lea.vmem %s32_s19, 512  ;;  %p508_p4 = scmp.lt.s32.totalorder %s32_s19, %s32_s19 }
   0xb   :  { %p504_p3 = scmp.ne.s32.totalorder %s32_s19, %s503_s27  ;;  %p509_p5 = scmp.lt.s32.totalorder %s503_s27, %s503_s27 }
   0xd   :  { %p510_p6 = por %p509_p5, %p508_p4 }
   0xf   :  { %p511_p7 = pnand %p510_p6, %p504_p3 }
  0x11   :  { %514 = shalt.err (!%p511_p7)
}
  0x12   :  { %s634_s28 = smov 128   ;;  %s635_s29 = smov 8  }
  0x13   :  { %37 = dma.hbm_to_vmem [thread:$0]  %s827_s1, 512, %s32_s19, [#allocation6], %s634_s28, %s634_s28, %s635_s29  }
  0x14   :  { %s636_s7 = smov [#allocation8]   ;;  %s637_s9 = smov [#allocation2]  }
  0x15   :  { %s54_s8 = sshll.u32 %s636_s7, 4  ;;  %s19_s10 = sshll.u32 %s637_s9, 4  ;;  %s55_s8 = int_to_ptr.vmem [resolvable:$true] %s54_s8  ;;  %s20_s10 = int_to_ptr.vmem [resolvable:$true] %s19_s10 }
  0x16   :  { %s515_s13 = scalar_lea.hbm %s829_s3, 128 }
  0x17   :  { %p516_p8 = scmp.ne.s32.totalorder %s829_s3, %s515_s13  ;;  %p519_p9 = scmp.lt.u32.totalorder %s515_s13, %s829_s3 }
  0x19   :  { %p521_p10 = pnand %p519_p9, %p516_p8 }
  0x1b   :  { %524 = shalt.err (!%p521_p10)
}
  0x1c   :  { %s525_s1 = scalar_lea.vmem %s55_s8, 128  ;;  %p530_p12 = scmp.lt.s32.totalorder %s55_s8, %s55_s8 }
  0x1d   :  { %p526_p11 = scmp.ne.s32.totalorder %s55_s8, %s525_s1  ;;  %p531_p13 = scmp.lt.s32.totalorder %s525_s1, %s525_s1 }
  0x1f   :  { %p532_p0 = por %p531_p13, %p530_p12 }
  0x21   :  { %p533_p1 = pnand %p532_p0, %p526_p11 }
  0x23   :  { %536 = shalt.err (!%p533_p1)
}
  0x24   :  { %57 = dma.hbm_to_vmem [thread:$0]  %s829_s3, 128, %s55_s8, [#allocation9]  }
  0x25   :  { %s537_s22 = scalar_lea.hbm %s826_s0, 2048 }
  0x26   :  { %p538_p2 = scmp.ne.s32.totalorder %s826_s0, %s537_s22  ;;  %p541_p3 = scmp.lt.u32.totalorder %s537_s22, %s826_s0 }
  0x28   :  { %p543_p4 = pnand %p541_p3, %p538_p2 }
  0x2a   :  { %546 = shalt.err (!%p543_p4)
}
  0x2b   :  { %s547_s27 = scalar_lea.vmem %s20_s10, 2048  ;;  %p552_p6 = scmp.lt.s32.totalorder %s20_s10, %s20_s10 }
  0x2c   :  { %p548_p5 = scmp.ne.s32.totalorder %s20_s10, %s547_s27  ;;  %p553_p7 = scmp.lt.s32.totalorder %s547_s27, %s547_s27 }
  0x2e   :  { %p554_p8 = por %p553_p7, %p552_p6 }
  0x30   :  { %p555_p9 = pnand %p554_p8, %p548_p5 }
  0x32   :  { %558 = shalt.err (!%p555_p9)
}
  0x33   :  { %s638_s3 = smov 256   ;;  %s639_s28 = smov 16  }
  0x34   :  { %25 = dma.hbm_to_vmem [thread:$0]  %s826_s0, 2048, %s20_s10, [#allocation3], %s638_s3, %s638_s3, %s639_s28  }
  0x35   :  { %s640_s6 = smov [#allocation7]   ;;  %s641_s8 = smov [#allocation10]  }
  0x36   :  { %s44_s7 = sshll.u32 %s640_s6, 4  ;;  %s64_s9 = sshll.u32 %s641_s8, 4  ;;  %s45_s7 = int_to_ptr.vmem [resolvable:$true] %s44_s7  ;;  %s65_s9 = int_to_ptr.vmem [resolvable:$true] %s64_s9 }
  0x37   :  { %s559_s13 = scalar_lea.hbm %s828_s2, 16 }
  0x38   :  { %p560_p10 = scmp.ne.s32.totalorder %s828_s2, %s559_s13  ;;  %p563_p11 = scmp.lt.u32.totalorder %s559_s13, %s828_s2 }
  0x3a   :  { %p565_p12 = pnand %p563_p11, %p560_p10 }
  0x3c   :  { %568 = shalt.err (!%p565_p12)
}
  0x3d   :  { %s569_s0 = scalar_lea.vmem %s45_s7, 16  ;;  %s573_s10 = scalar_lea.vmem %s45_s7, 32 }
  0x3e   :  { %p570_p13 = scmp.ne.s32.totalorder %s45_s7, %s569_s0  ;;  %p574_p0 = scmp.lt.s32.totalorder %s45_s7, %s45_s7 }
  0x3f   :  { %p575_p1 = scmp.lt.s32.totalorder %s573_s10, %s569_s0 }
  0x41   :  { %p576_p2 = por %p575_p1, %p574_p0 }
  0x43   :  { %p577_p3 = pnand %p576_p2, %p570_p13 }
  0x45   :  { %580 = shalt.err (!%p577_p3)
}
  0x46   :  { %47 = dma.hbm_to_vmem [thread:$0]  %s828_s2, 16, %s45_s7, [#allocation6]  }
  0x47   :  { %s581_s21 = scalar_lea.hbm %s830_s4, 16 }
  0x48   :  { %p582_p4 = scmp.ne.s32.totalorder %s830_s4, %s581_s21  ;;  %p585_p5 = scmp.lt.u32.totalorder %s581_s21, %s830_s4 }
  0x4a   :  { %p587_p6 = pnand %p585_p5, %p582_p4 }
  0x4c   :  { %590 = shalt.err (!%p587_p6)
}
  0x4d   :  { %s591_s26 = scalar_lea.vmem %s65_s9, 16  ;;  %s595_s27 = scalar_lea.vmem %s65_s9, 32 }
  0x4e   :  { %p592_p7 = scmp.ne.s32.totalorder %s65_s9, %s591_s26  ;;  %p596_p8 = scmp.lt.s32.totalorder %s65_s9, %s65_s9 }
  0x4f   :  { %p597_p9 = scmp.lt.s32.totalorder %s595_s27, %s591_s26 }
  0x51   :  { %p598_p10 = por %p597_p9, %p596_p8 }
  0x53   :  { %p599_p11 = pnand %p598_p10, %p592_p7 }
  0x55   :  { %602 = shalt.err (!%p599_p11)
}
  0x56   :  { %67 = dma.hbm_to_vmem [thread:$0]  %s830_s4, 16, %s65_s9, [#allocation9]  }
  0x57   :  { %625 = dma.done.wait [#allocation3], 2048  }
  0x58   :  { %626 = vsyncadd [#allocation3], 4294965248 }
  0x59   :  { %627 = dma.done.wait [#allocation6], 528  }
  0x5a   :  { %628 = vsyncadd [#allocation6], 4294966768 }
  0x5b   :  { %629 = dma.done.wait [#allocation9], 144  }
  0x5c   :  { %630 = vsyncadd [#allocation9], 4294967152  ;;  %v739_v0 = vld [vmem:[#allocation2 + $0x40] sm:$0xff]  ;;  %v741_v1 = vld [vmem:[#allocation2 + $0x48] sm:$0xff]  ;;  %v642_v27 = vmov 0.0|0.0   ;;  %vm643_vm0 = vmmov 0   ;;  %v150_v32 = vlaneseq }
  0x5d   :  { %v743_v2 = vld [vmem:[#allocation2] sm:$0xff]  ;;  %v111_v3 = vadd.f32 %v741_v1, %v739_v0  ;;  %v747_v4 = vld [vmem:[#allocation2 + $0x8] sm:$0xff]  ;;  %v749_v5 = vld [vmem:[#allocation2 + $0x50] sm:$0xff]  ;;  %474 = vmatprep.subr.bf16.mxu0 %v642_v27  ;;  %v644_v31 = vmov 0.0   ;;  %vm161_vm1 = vcmask 130112   ;;  %vm168_vm2 = vcmask 195712  }
  0x5e   :  { %v751_v6 = vld [vmem:[#allocation2 + $0x58] sm:$0xff]  ;;  %v99_v7 = vadd.f32 %v747_v4, %v743_v2  ;;  %v755_v8 = vld [vmem:[#allocation2 + $0x10] sm:$0xff]  ;;  %v763_v12 = vld [vmem:[#allocation2 + $0x60] sm:$0xff]  ;;  %466 = vmatprep.mubr.msk.f32.mxu0 %vm643_vm0, %v644_v31  ;;  %469 = vmatprep.subr.mxu1 %v644_v31  ;;  %v151_v34 = vand.u32 127, %v150_v32  ;;  %v787_v39 = vshrl.u32 %v150_v32, 7  ;;  %vm175_vm3 = vcmask 261312  }
  0x5f   :  { %v757_v9 = vld [vmem:[#allocation2 + $0x18] sm:$0xff]  ;;  %112 = vadd.xlane.f32.xlu1 %v111_v3  ;;  %v114_v10 = vadd.f32 %v751_v6, %v749_v5  ;;  %v765_v13 = vld [vmem:[#allocation2 + $0x68] sm:$0xff]  ;;  %v767_v14 = vld [vmem:[#allocation2 + $0x20] sm:$0xff]  ;;  %471 = vmatprep.mubr.msk.f32.mxu1 %vm643_vm0, %v644_v31  ;;  %vm196_vm4 = vcmask 1041409   ;;  %vm198_vm5 = vcmask 261120   ;;  %vm280_vm6 = vcmask 64512  }
  0x60   :  { %100 = vadd.xlane.f32.xlu0 %v99_v7  ;;  %v102_v11 = vadd.f32 %v757_v9, %v755_v8  ;;  %v769_v15 = vld [vmem:[#allocation2 + $0x28] sm:$0xff]  ;;  %v117_v16 = vadd.f32 %v765_v13, %v763_v12  ;;  %v775_v18 = vld [vmem:[#allocation2 + $0x70] sm:$0xff]  ;;  %v777_v19 = vld [vmem:[#allocation2 + $0x78] sm:$0xff]  ;;  %v156_v36 = vadd.s32 4294967288, %v151_v34  ;;  %v163_v38 = vadd.s32 4294967280, %v151_v34  ;;  %s645_s4 = smov [#allocation11]  }
  0x61   :  { %v105_v17 = vadd.f32 %v769_v15, %v767_v14  ;;  %v779_v20 = vld [vmem:[#allocation2 + $0x30] sm:$0xff]  ;;  %v781_v21 = vld [vmem:[#allocation2 + $0x38] sm:$0xff]  ;;  %v120_v22 = vadd.f32 %v777_v19, %v775_v18  ;;  %v131_v24 = vld [vmem:[#allocation5] sm:$0xff]  ;;  %v170_v43 = vadd.s32 4294967272, %v151_v34  ;;  %v154_v47 = vsub.s32 %v151_v34, %v787_v39  ;;  %s433_s30 = sshll.u32 %s645_s4, 4  ;;  %s434_s30 = int_to_ptr.vmem [resolvable:$true] %s433_s30 }
  0x62   :  { %v108_v23 = vadd.f32 %v781_v21, %v779_v20  ;;  %v132_v25 = vld [vmem:[#allocation5 + $0x8] sm:$0xff]  ;;  %v133_v28 = vld [vmem:[#allocation5 + $0x10] sm:$0xff]  ;;  %v134_v29 = vld [vmem:[#allocation5 + $0x18] sm:$0xff]  ;;  %v159_v41 = vsub.s32 %v156_v36, %v787_v39  ;;  %v166_v45 = vsub.s32 %v163_v38, %v787_v39  ;;  %v360_v38 = vsub.s32 0, %v787_v39  ;;  %s603_s6 = scalar_lea.vmem %s434_s30, 2048  ;;  %p608_p13 = scmp.lt.s32.totalorder %s434_s30, %s434_s30 }
  0x63   :  { %115 = vadd.xlane.f32.xlu1 %v114_v10  ;;  %v475_v26 = vpack.c.bf16 %v132_v25, %v131_v24  ;;  %v478_v30 = vpack.c.bf16 %v134_v29, %v133_v28  ;;  %v173_v54 = vsub.s32 %v170_v43, %v787_v39  ;;  %v272_v25 = vld [vmem:[#allocation8] sm:$0xff]  ;;  %v449_v31 = vld [vmem:[#allocation10] ss:$0 sm:$0xff]  ;;  %p604_p12 = scmp.ne.s32.totalorder %s434_s30, %s603_s6  ;;  %p609_p0 = scmp.lt.s32.totalorder %s603_s6, %s603_s6 }
  0x64   :  { %103 = vadd.xlane.f32.xlu0 %v102_v11  ;;  %470 = vmatpush3.msra.mxu1 %v272_v25 }
  0x65   :  { %476 = vmatpush3.bf16.msra.mxu0 %v475_v26  ;;  %v447_v26 = vld [vmem:[#allocation7] ss:$0 sm:$0xff]  ;;  %p610_p1 = por %p609_p0, %p608_p13 }
  0x66   :  { %477 = vmatprep.subr.bf16.mxu0 %v642_v27 }
  0x67   :  { %118 = vadd.xlane.f32.xlu1 %v117_v16  ;;  %p611_p2 = pnand %p610_p1, %p604_p12 }
  0x68   :  { %106 = vadd.xlane.f32.xlu0 %v105_v17 }
  0x69   :  { %479 = vmatpush3.bf16.msra.mxu0 %v478_v30 }
  0x6b   :  { %121 = vadd.xlane.f32.xlu1 %v120_v22 }
  0x6c   :  { %109 = vadd.xlane.f32.xlu0 %v108_v23 }
  0xec   :  { %v113_v33 = vpop.xlane.xlu1 %112 }
  0xed   :  { %v101_v35 = vpop.xlane.xlu0 %100  ;;  %v127_v48 = vmul.f32 0.00390625, %v113_v33 }
  0xee   :  { %v123_v51 = vmul.f32 0.00390625, %v101_v35 }
  0xef   :  { %v180_v58 = vrot.slane %v127_v48, %v154_v47 }
  0xf0   :  { %v116_v37 = vpop.xlane.xlu1 %115  ;;  %v155_v62 = vrot.slane %v123_v51, %v154_v47 }
  0xf1   :  { %v104_v40 = vpop.xlane.xlu0 %103  ;;  %v128_v42 = vmul.f32 0.00390625, %v116_v37 }
  0xf2   :  { %v124_v44 = vmul.f32 0.00390625, %v104_v40 }
  0xf3   :  { %v184_v53 = vrot.slane %v128_v42, %v159_v41  ;;  %v379_v42 = vsub.s32 1, %v787_v39 }
  0xf4   :  { %v119_v46 = vpop.xlane.xlu1 %118  ;;  %v160_v55 = vrot.slane %v124_v44, %v159_v41 }
  0xf5   :  { %v129_v49 = vmul.f32 0.00390625, %v119_v46  ;;  %v107_v50 = vpop.xlane.xlu0 %106  ;;  %v185_v3 = vsel %vm161_vm1, %v184_v53, %v180_v58 }
  0xf6   :  { %v125_v52 = vmul.f32 0.00390625, %v107_v50  ;;  %v162_v10 = vsel %vm161_vm1, %v160_v55, %v155_v62 }
  0xf7   :  { %v189_v56 = vrot.slane %v129_v49, %v166_v45 }
  0xf8   :  { %v122_v57 = vpop.xlane.xlu1 %121  ;;  %v167_v59 = vrot.slane %v125_v52, %v166_v45 }
  0xf9   :  { %v130_v60 = vmul.f32 0.00390625, %v122_v57  ;;  %v110_v61 = vpop.xlane.xlu0 %109  ;;  %v190_v11 = vsel %vm168_vm2, %v189_v56, %v185_v3 }
  0xfa   :  { %v126_v63 = vmul.f32 0.00390625, %v110_v61  ;;  %v169_v17 = vsel %vm168_vm2, %v167_v59, %v162_v10 }
  0xfb   :  { %v194_v7 = vrot.slane %v130_v60, %v173_v54 }
  0xfc   :  { %v174_v16 = vrot.slane %v126_v63, %v173_v54 }
  0xfd   :  { %v195_v22 = vsel %vm175_vm3, %v194_v7, %v190_v11 }
  0xfe   :  { %v176_v23 = vsel %vm175_vm3, %v174_v16, %v169_v17 }
  0xff   :  { %v197_v24 = vsel %vm196_vm4, %v195_v22, %v176_v23 }
 0x100   :  { %467 = vmatmul.mubr.msk.f32.vlgmr.msra.gmra.mrb[0].mxu0 %vm198_vm5, %v197_v24 }
 0x1d3   :  { %v267_v27 = vpop.f32.mrb[0].mxu0 }
 0x1d4   :  { %v268_v28 = vadd.f32 %v447_v26, %v267_v27  ;;  %v468_v29 = vpop.f32.mrb[1].mxu0 }
 0x1d6   :  { %v271_v30 = vmax.f32 %v268_v28, 0.0 }
 0x1d8   :  { %472 = vmatmul.mubr.msk.f32.vlgmr.msra.gmra.mrb[0].mxu1 %vm280_vm6, %v271_v30 }
 0x2ab   :  { %v350_v32 = vpop.f32.mrb[0].mxu1 }
 0x2ac   :  { %v351_v33 = vadd.f32 %v449_v31, %v350_v32  ;;  %v473_v34 = vpop.f32.mrb[1].mxu1 }
 0x2ae   :  { %v354_v35 = vmul.f32 0.16666667, %v351_v33 }
 0x2b0   :  { %v355_v36 = vadd.f32 0.5, %v354_v35 }
 0x2b2   :  { %v356_v37 = vmax.f32 %v355_v36, 0.0 }
 0x2b4   :  { %v357_v40 = vmin.f32 %v356_v37, 1.0 }
 0x2b6   :  { %v361_v41 = vrot.slane %v357_v40, %v360_v38  ;;  %v380_v43 = vrot.slane %v357_v40, %v379_v42 }
 0x2b8   :  { %367 = vbcast.lane.b32.xlu1 %v361_v41, 264  ;;  %363 = vbcast.lane.b32.xlu0 %v361_v41, 256 }
 0x2bc   :  { %371 = vbcast.lane.b32.xlu1 %v361_v41, 272  ;;  %382 = vbcast.lane.b32.xlu0 %v380_v43, 256 }
 0x2c0   :  { %375 = vbcast.lane.b32.xlu1 %v361_v41, 280  ;;  %390 = vbcast.lane.b32.xlu0 %v380_v43, 272 }
 0x2c4   :  { %386 = vbcast.lane.b32.xlu1 %v380_v43, 264 }
 0x2c8   :  { %394 = vbcast.lane.b32.xlu1 %v380_v43, 280 }
 0x32a   :  { %v368_v44 = vpop.permute.xlu1 %367  ;;  %v364_v45 = vpop.permute.xlu0 %363 }
 0x32b   :  { %v398_v46 = vmul.f32 %v368_v44, %v755_v8  ;;  %v399_v47 = vmul.f32 %v368_v44, %v757_v9  ;;  %v396_v48 = vmul.f32 %v364_v45, %v743_v2  ;;  %v397_v49 = vmul.f32 %v364_v45, %v747_v4 }
 0x32d   :  { %414 = vst [vmem:[#allocation11 + $0x10] sm:$0xff] %v398_v46  ;;  %415 = vst [vmem:[#allocation11 + $0x18] sm:$0xff] %v399_v47 }
 0x32e   :  { %412 = vst [vmem:[#allocation11] sm:$0xff] %v396_v48  ;;  %413 = vst [vmem:[#allocation11 + $0x8] sm:$0xff] %v397_v49  ;;  %v372_v39 = vpop.permute.xlu1 %371  ;;  %v383_v50 = vpop.permute.xlu0 %382 }
 0x32f   :  { %v400_v51 = vmul.f32 %v372_v39, %v767_v14  ;;  %v401_v52 = vmul.f32 %v372_v39, %v769_v15  ;;  %v404_v53 = vmul.f32 %v383_v50, %v739_v0  ;;  %v405_v8 = vmul.f32 %v383_v50, %v741_v1 }
 0x331   :  { %416 = vst [vmem:[#allocation11 + $0x20] sm:$0xff] %v400_v51  ;;  %417 = vst [vmem:[#allocation11 + $0x28] sm:$0xff] %v401_v52 }
 0x332   :  { %420 = vst [vmem:[#allocation11 + $0x40] sm:$0xff] %v404_v53  ;;  %421 = vst [vmem:[#allocation11 + $0x48] sm:$0xff] %v405_v8  ;;  %v376_v2 = vpop.permute.xlu1 %375  ;;  %v391_v4 = vpop.permute.xlu0 %390 }
 0x333   :  { %v402_v9 = vmul.f32 %v376_v2, %v779_v20  ;;  %v403_v54 = vmul.f32 %v376_v2, %v781_v21  ;;  %v408_v55 = vmul.f32 %v391_v4, %v763_v12  ;;  %v409_v14 = vmul.f32 %v391_v4, %v765_v13 }
 0x335   :  { %418 = vst [vmem:[#allocation11 + $0x30] sm:$0xff] %v402_v9  ;;  %419 = vst [vmem:[#allocation11 + $0x38] sm:$0xff] %v403_v54 }
 0x336   :  { %424 = vst [vmem:[#allocation11 + $0x60] sm:$0xff] %v408_v55  ;;  %425 = vst [vmem:[#allocation11 + $0x68] sm:$0xff] %v409_v14  ;;  %v387_v0 = vpop.permute.xlu1 %386 }
 0x337   :  { %v406_v1 = vmul.f32 %v387_v0, %v749_v5  ;;  %v407_v15 = vmul.f32 %v387_v0, %v751_v6 }
 0x339   :  { %422 = vst [vmem:[#allocation11 + $0x50] sm:$0xff] %v406_v1  ;;  %423 = vst [vmem:[#allocation11 + $0x58] sm:$0xff] %v407_v15 }
 0x33a   :  { %v395_v20 = vpop.permute.xlu1 %394 }
 0x33b   :  { %v410_v21 = vmul.f32 %v395_v20, %v775_v18  ;;  %v411_v12 = vmul.f32 %v395_v20, %v777_v19 }
 0x33d   :  { %426 = vst [vmem:[#allocation11 + $0x70] sm:$0xff] %v410_v21  ;;  %427 = vst [vmem:[#allocation11 + $0x78] sm:$0xff] %v411_v12 }
 0x33e   :  { %614 = shalt.err (!%p611_p2)
}
 0x33f   :  { %s615_s9 = scalar_lea.hbm %s831_s5, 2048 }
 0x340   :  { %p616_p3 = scmp.ne.s32.totalorder %s831_s5, %s615_s9  ;;  %p619_p4 = scmp.lt.u32.totalorder %s615_s9, %s831_s5 }
 0x342   :  { %p621_p5 = pnand %p619_p4, %p616_p3 }
 0x344   :  { %624 = shalt.err (!%p621_p5)
}
 0x345   :  { %439 = dma.vmem_to_hbm [thread:$0]  %s434_s30, 2048, %s831_s5, [#allocation4], %s638_s3, %s638_s3, %s639_s28  }
 0x346   :  { %631 = dma.done.wait [#allocation4], 2048  }
 0x347   :  { %632 = vsyncadd [#allocation4], 4294965248 }
 0x348   :  { %443 = vsyncpa [#allocation3], 1 }
 0x349   :  { %444 = vsyncpa [#allocation6], 1 }
 0x34a   :  { %445 = vsyncpa [#allocation9], 1 }
 0x34b   :  { %446 = vsyncpa [#allocation4], 1 }

</bundles_post_ra>
